<compile_context>
chip_gen: v7x
topology: tpu7x:2x2x1
jax: 0.10.0
libtpu: 0.0.40
codegen_flags: <defaults>
</compile_context>

<pallas_src>
from functools import partial

import jax
import jax.numpy as jnp
from jax.experimental import pallas as pl
from jax.experimental.pallas import tpu as pltpu


# ----------------------------- Pallas kernel ------------------------------

def _pos_concat_kernel(x_ref, pos_ref, o_ref, *, S):
    """Per grid step (b, j):
       x_ref   : (1, C, S)        -- S spatial positions (lane axis)
       pos_ref : (2P, S)          -- per-tile positional slab,  OR
                 (2P, HW)         -- full resident slab (constant index_map)
       o_ref   : (1, C + 2P, S)
    """
    C = x_ref.shape[1]

    # 1) passthrough of the input channels (pure lane-dense copy)
    o_ref[0, :C, :] = x_ref[0]

    # 2) positional channels: straight copy from the precomputed slab.
    if pos_ref.shape[1] == S:
        # slab block already matches this spatial tile
        o_ref[0, C:, :] = pos_ref[...]
    else:
        # resident full-HW slab: slice the current lane-aligned window
        start = pl.multiple_of(pl.program_id(1) * S, S)
        o_ref[0, C:, :] = pos_ref[:, pl.ds(start, S)]


# ------------------------------- wrapper -----------------------------------

# Budget the double-buffered in/out tiles against the *v5e* scoped-VMEM default
# (16 MiB), leaving headroom for the (optionally resident) pos slab.
_TILE_VMEM_BUDGET_BYTES = 10 * 1024 * 1024
_POS_RESIDENT_MAX_BYTES = 2 * 1024 * 1024


def _pick_rows_per_block(H, W, B, C, P, itemsize):
    """Largest divisor rpb of H such that S = rpb*W is a multiple of 128 lanes
    and the (conservatively double-buffered) tiles fit the VMEM budget.
    Falls back to the full image. When B == 1, prefer >= 2 spatial tiles so
    both v7x TensorCores get work."""
    Cout = C + 2 * P

    def tile_bytes(rpb):
        S = rpb * W
        # 2x (input tile + output tile + per-tile pos slab), conservative
        return 2 * (C * S + Cout * S + 2 * P * S) * itemsize

    best = None
    for rpb in range(1, H + 1):
        if H % rpb:
            continue
        S = rpb * W
        if S % 128 == 0 and tile_bytes(rpb) <= _TILE_VMEM_BUDGET_BYTES:
            best = rpb                       # keep the largest valid candidate
    if best is None:
        best = H                             # full-extent block is always legal

    # v7x has 2 TensorCores: with B == 1 make sure the parallel grid has >= 2 steps.
    if B == 1 and (H // best) < 2:
        for rpb in range(best - 1, 0, -1):
            if H % rpb == 0 and (rpb * W) % 128 == 0:
                best = rpb
                break
    return best


def position_embedding_learned(x, row_embed, col_embed, *, rows_per_block=None):
    """x: (B, C, H, W); row_embed: (FH, P); col_embed: (FW, P), FH>=H, FW>=W.
    Returns (B, C + 2P, H, W) in x.dtype: cat([x, learned pos embedding], dim=1)."""
    B, C, H, W = x.shape
    P = row_embed.shape[1]
    assert col_embed.shape[1] == P
    assert row_embed.shape[0] >= H and col_embed.shape[0] >= W
    HW = H * W
    dt = x.dtype
    itemsize = jnp.dtype(dt).itemsize
    Cout = C + 2 * P

    # Precompute the positional slab once (tiny, pure layout plumbing):
    #   pos[p,     h*W + w] = col_embed[w, p]     (first  P channels)
    #   pos[P + p, h*W + w] = row_embed[h, p]     (second P channels)
    colT = col_embed[:W].T.astype(dt)                                   # (P, W)
    rowT = row_embed[:H].T.astype(dt)                                   # (P, H)
    pos_col = jnp.broadcast_to(colT[:, None, :], (P, H, W)).reshape(P, HW)
    pos_row = jnp.broadcast_to(rowT[:, :, None], (P, H, W)).reshape(P, HW)
    pos = jnp.concatenate([pos_col, pos_row], axis=0)                   # (2P, HW)

    if rows_per_block is None:
        rows_per_block = _pick_rows_per_block(H, W, B, C, P, itemsize)
    assert H % rows_per_block == 0
    S = rows_per_block * W
    assert S % 128 == 0 or S == HW, "spatial block must be lane-aligned or full"
    nsb = HW // S

    x_flat = x.reshape(B, C, HW)          # free view: NCHW is HW-contiguous

    pos_bytes = 2 * P * HW * itemsize
    if pos_bytes <= _POS_RESIDENT_MAX_BYTES:
        # Constant index_map -> fetched into VMEM once, stays resident; the
        # kernel slices the current spatial window with pl.ds.
        pos_spec = pl.BlockSpec((2 * P, HW), lambda b, j: (0, 0))
    else:
        # Large images: stream the matching slab tile per step instead.
        pos_spec = pl.BlockSpec((2 * P, S), lambda b, j: (0, j))

    out = pl.pallas_call(
        partial(_pos_concat_kernel, S=S),
        out_shape=jax.ShapeDtypeStruct((B, Cout, HW), dt),
        grid=(B, nsb),
        in_specs=[
            pl.BlockSpec((1, C, S), lambda b, j: (b, 0, j)),
            pos_spec,
        ],
        out_specs=pl.BlockSpec((1, Cout, S), lambda b, j: (b, 0, j)),
        compiler_params=pltpu.CompilerParams(
            dimension_semantics=("parallel", "parallel"),
        ),
    )(x_flat, pos)
    return out.reshape(B, Cout, H, W)


# ------------------------- pure-JAX reference ------------------------------

def position_embedding_learned_ref(x, row_embed, col_embed):
    B, C, H, W = x.shape
    P = row_embed.shape[1]
    x_emb = col_embed[:W]                                      # (W, P)
    y_emb = row_embed[:H]                                      # (H, P)
    pos = jnp.concatenate([
        jnp.broadcast_to(x_emb[None, :, :], (H, W, P)),        # varies along W
        jnp.broadcast_to(y_emb[:, None, :], (H, W, P)),        # varies along H
    ], axis=-1)                                                # (H, W, 2P)
    pos = jnp.transpose(pos, (2, 0, 1))                        # (2P, H, W)
    pos = jnp.broadcast_to(pos[None], (B, 2 * P, H, W))
    return jnp.concatenate([x, pos], axis=1)


# --------------------------------- main -------------------------------------

if __name__ == "__main__":
    key = jax.random.PRNGKey(0)
    kx, kr, kc = jax.random.split(key, 3)

    B, C, H, W = 2, 32, 16, 16
    P = 64                    # num_pos_feats (kept small for the demo)
    FH, FW = 32, 32           # feature_size: embedding table extents >= (H, W)

    x = jax.random.normal(kx, (B, C, H, W), jnp.float32)
    # nn.init.uniform_ -> U[0, 1)
    row_embed = jax.random.uniform(kr, (FH, P), dtype=jnp.float32)
    col_embed = jax.random.uniform(kc, (FW, P), dtype=jnp.float32)

    ref = position_embedding_learned_ref(x, row_embed, col_embed)

    # default path: resident pos slab, full-image spatial tile, grid (B, 1)
    out = position_embedding_learned(x, row_embed, col_embed)
    jax.block_until_ready(out)
    assert out.shape == (B, C + 2 * P, H, W) and out.dtype == jnp.float32
    assert bool(jnp.all(jnp.isfinite(out)))
    assert float(jnp.max(jnp.abs(out - ref))) < 1e-5

    # multi-tile spatial grid path: grid (B, 2), 128-lane tiles, pl.ds slicing
    out2 = position_embedding_learned(x, row_embed, col_embed, rows_per_block=8)
    jax.block_until_ready(out2)
    assert float(jnp.max(jnp.abs(out2 - ref))) < 1e-5

    # dtype-preserving path: bf16 in -> bf16 out, kernel is a pure copy
    x_bf = x.astype(jnp.bfloat16)
    out_bf = position_embedding_learned(x_bf, row_embed, col_embed)
    jax.block_until_ready(out_bf)
    assert out_bf.dtype == jnp.bfloat16
    ref_bf = position_embedding_learned_ref(
        x_bf.astype(jnp.float32),
        row_embed.astype(jnp.bfloat16).astype(jnp.float32),
        col_embed.astype(jnp.bfloat16).astype(jnp.float32))
    assert float(jnp.max(jnp.abs(out_bf.astype(jnp.float32) - ref_bf))) < 1e-6

    print("KERNEL_OK")
</pallas_src>

<mosaic_0001>
module attributes {stable_mosaic.version = 11 : i64} {
  func.func @_pos_concat_kernel(%arg0: i32, %arg1: i32, %arg2: memref<1x32x256xf32, #tpu.memory_space<vmem>>, %arg3: memref<128x256xf32, #tpu.memory_space<vmem>>, %arg4: memref<1x160x256xf32, #tpu.memory_space<vmem>>) attributes {dimension_semantics = [#tpu.dimension_semantics<parallel>, #tpu.dimension_semantics<parallel>], iteration_bounds = array<i64: 2, 1>, scalar_prefetch = 0 : i64, scratch_operands = 0 : i64, tpu.core_type = #tpu.core_type<tc>, window_params = [{transform_indices = @transform_0, window_bounds = array<i64: 1, 32, 256>}, {pipeline_mode = #tpu.pipeline_mode<synchronous>, transform_indices = @transform_1, window_bounds = array<i64: 128, 256>}, {transform_indices = @transform_2, window_bounds = array<i64: 1, 160, 256>}]} {
    %c0 = arith.constant 0 : index
    %c0_0 = arith.constant 0 : index
    %c0_1 = arith.constant 0 : index
    %0 = vector.load %arg2[%c0, %c0_0, %c0_1] : memref<1x32x256xf32, #tpu.memory_space<vmem>>, vector<1x32x256xf32>
    %1 = vector.shape_cast %0 : vector<1x32x256xf32> to vector<32x256xf32>
    %c0_2 = arith.constant 0 : index
    %c0_3 = arith.constant 0 : index
    %c0_4 = arith.constant 0 : index
    %2 = vector.load %arg4[%c0_2, %c0_3, %c0_4] : memref<1x160x256xf32, #tpu.memory_space<vmem>>, vector<1x32x256xf32>
    %3 = vector.shape_cast %2 : vector<1x32x256xf32> to vector<32x256xf32>
    %4 = vector.shape_cast %1 : vector<32x256xf32> to vector<1x32x256xf32>
    tpu.vector_store %arg4[%c0_2, %c0_3, %c0_4], %4 {strides = array<i32>} : memref<1x160x256xf32, #tpu.memory_space<vmem>>, vector<1x32x256xf32>,
    %c0_5 = arith.constant 0 : index
    %c0_6 = arith.constant 0 : index
    %5 = vector.load %arg3[%c0_5, %c0_6] : memref<128x256xf32, #tpu.memory_space<vmem>>, vector<128x256xf32>
    %c0_7 = arith.constant 0 : index
    %c32 = arith.constant 32 : index
    %c0_8 = arith.constant 0 : index
    %6 = vector.load %arg4[%c0_7, %c32, %c0_8] : memref<1x160x256xf32, #tpu.memory_space<vmem>>, vector<1x128x256xf32>
    %7 = vector.shape_cast %6 : vector<1x128x256xf32> to vector<128x256xf32>
    %8 = vector.shape_cast %5 : vector<128x256xf32> to vector<1x128x256xf32>
    tpu.vector_store %arg4[%c0_7, %c32, %c0_8], %8 {strides = array<i32>} : memref<1x160x256xf32, #tpu.memory_space<vmem>>, vector<1x128x256xf32>,
    return
  }
  func.func @transform_0(%arg0: i32, %arg1: i32) -> (i32, i32, i32) {
    %c0_i32 = arith.constant 0 : i32
    %c0_i32_0 = arith.constant 0 : i32
    return %arg0, %c0_i32, %arg1 : i32, i32, i32
  }
  func.func @transform_1(%arg0: i32, %arg1: i32) -> (i32, i32) {
    %c0_i32 = arith.constant 0 : i32
    %c0_i32_0 = arith.constant 0 : i32
    %c0_i32_1 = arith.constant 0 : i32
    return %c0_i32, %c0_i32_0 : i32, i32
  }
  func.func @transform_2(%arg0: i32, %arg1: i32) -> (i32, i32, i32) {
    %c0_i32 = arith.constant 0 : i32
    %c0_i32_0 = arith.constant 0 : i32
    return %arg0, %c0_i32, %arg1 : i32, i32, i32
  }
}

</mosaic_0001>

<bundles_post_ra>
// kernel: tpu_custom_call.1
= control target key start
LH: loop header
LB: loop body
LE: loop exit
PB: predicated region body
PF: predicated region fallthrough
CT: control target
= control target key end

     0   :  { %7 = vsyncpa [#allocation3], 0  ;;  %s921_s0 = inlined_call_operand.hbm [shape: f32[2,32,256], index: 0, kind: input, shape index: {}]   ;;  %s922_s1 = inlined_call_operand.hbm [shape: f32[128,256], index: 1, kind: input, shape index: {}]   ;;  %s923_s2 = inlined_call_operand.hbm [shape: f32[2,160,256], index: 2, kind: output, shape index: {}]  }
   0x1   :  { %9 = vsyncpa [#allocation3 + $0x1], 0 }
   0x2   :  { %10 = vsyncpa [#allocation6], 0 }
   0x3   :  { %11 = vsyncpa [#allocation4], 0 }
   0x4   :  { %13 = vsyncpa [#allocation4 + $0x1], 0  ;;  %s652_s9 = smov 0   ;;  %s654_s10 = smov 0  }
   0x5   :  { %s656_s11 = smov 0   ;;  %s658_s12 = smov 0  }
   0x6   :  { %s660_s13 = smov 0   ;;  %s662_s14 = smov 0  }
   0x7 LB: > { %s390_s15 = sadd.s32 4294967295, %s628_s14   ;;  %s391_s16 = sadd.s32 4294967294, %s628_s14   ;;  %s628_s14 = sphi %s662_s14, %s19_s14   ;;  %s624_s13 = sphi %s660_s13, %s947_s13   ;;  %s620_s12 = sphi %s658_s12, %s946_s12   ;;  %s616_s11 = sphi %s656_s11, %s945_s11   ;;  %s612_s10 = sphi %s654_s10, %s944_s10   ;;  %s608_s9 = sphi %s652_s9, %s943_s9  }
   0x8   : > { %p53_p0 = scmp.ne.s32.totalorder %s612_s10, %s608_s9  ;;  %p686_p1 = scmp.eq.s32.totalorder %s390_s15, 0 }
   0x9   : > { %p690_p2 = scmp.eq.s32.totalorder %s390_s15, 1  ;;  %p106_p3 = scmp.eq.s32.totalorder %s391_s16, 1 }
   0xa   : > { %s928_s17 = scalar_select %p686_p1, 1, 0 }
   0xb   : > { %s929_s18 = scalar_select %p690_p2, 1, 0 }
   0xc   : > { %p696_p4 = por %p686_p1, %p53_p0  ;;  %p392_p5 = scmp.ge.s32.totalorder %s628_s14, 1 }
   0xd   : > { %p701_p6 = por %p106_p3, %p53_p0  ;;  %p113_p7 = scmp.lt.s32.totalorder %s628_s14, 3 }
   0xe   : > { %s930_s19 = scalar_select %p696_p4, 1, 0 }
   0xf   : > { %s931_s20 = scalar_select %p701_p6, 1, 0 }
  0x10   : > { %p706_p8 = pnand %p392_p5, %p113_p7  ;;  %s630_s22 = smov [#allocation5]  }
  0x11   : > { %s125_s23 = sshll.u32 %s630_s22, 4  ;;  %s31_s25 = sadd.s32 1, %s624_s13  ;;  %s126_s23 = int_to_ptr.vmem [resolvable:$true] %s125_s23 }
  0x12   : > { %s932_s21 = scalar_select %p706_p8, 1, 0 }
  0x13   : > { %p415_p9 = pneg %p706_p8  ;;  %s484_s28 = scalar_lea.hbm %s922_s1, 4096 }
  0x14   : > { %p485_p12 = scmp.ne.s32.totalorder %s922_s1, %s484_s28  ;;  %p491_p5 = scmp.lt.u32.totalorder %s484_s28, %s922_s1 }
  0x15   : > { %p715_p11 = pnand %p415_p9, %p686_p1 }
  0x17   : > { %p486_p13 = pneg %p715_p11 }
  0x19   : > { %p487_p0 = pnand %p486_p13, %p485_p12 }
  0x1b   : > { %p488_p3 = pneg %p487_p0 }
  0x1d   : > { %p493_p7 = pnand %p491_p5, %p488_p3 }
  0x1f   : > { %496 = shalt.err (!%p493_p7)
}
  0x20   : > { %s497_s5 = scalar_lea.vmem %s126_s23, 4096  ;;  %p505_p1 = scmp.lt.s32.totalorder %s126_s23, %s126_s23 }
  0x21   : > { %p498_p9 = scmp.ne.s32.totalorder %s126_s23, %s497_s5  ;;  %p506_p4 = scmp.lt.s32.totalorder %s497_s5, %s497_s5 }
  0x23   : > { %p500_p10 = pnand %p498_p9, %p486_p13  ;;  %p507_p8 = por %p506_p4, %p505_p1 }
  0x25   : > { %p501_p6 = pneg %p500_p10 }
  0x27   : > { %p508_p2 = pnand %p507_p8, %p501_p6 }
  0x29   : > { %511 = shalt.err (!%p508_p2)
}
  0x2a   : > { %s631_s6 = smov 256   ;;  %s632_s7 = smov 16  }
  0x2b   : > { %418 = dma.hbm_to_vmem [thread:$0]  (!%p715_p11), %s922_s1, 4096, %s126_s23, [#allocation6], %s631_s6, %s631_s6, %s632_s7  }
  0x2c   : > { %p33_p1 = scmp.ge.s32.totalorder %s31_s25, 2  ;;  %s40_s16 = sadd.s32 1, %s616_s11 }
  0x2d   : > { %p47_p2 = scmp.ne.s32.totalorder %s616_s11, %s612_s10  ;;  %p48_p4 = scmp.eq.s32.totalorder %s628_s14, 0 }
  0x2e   : > { %s949_s25 = smov (%p33_p1, %s31_s25), 0  ;;  %p935_p8 = scmp.ne.s32.totalorder %s929_s18, 0 }
  0x2f   : > { %p745_p6 = por %p48_p4, %p47_p2  ;;  %s35_s26 = ssub.s32 %s624_s13, %s949_s25 }
  0x30   : > { %p751_p10 = por %p935_p8, %p47_p2  ;;  %p428_p12 = scmp.lt.s32.totalorder %s628_s14, 2 }
  0x31   : > { %p38_p11 = scmp.eq.s32.totalorder %s35_s26, 0  ;;  %s139_s23 = sand.u32 1, %s616_s11  }
  0x32   : > { %s395_s27 = sshll.u32 %s139_s23, 6  ;;  %s404_s29 = sshll.u32 %s624_s13, 10 }
  0x33   : > { %s760_s28 = scalar_select %p38_p11, %s616_s11, %s40_s16  }
  0x34   : > { %s766_s4 = scalar_lea.hbm %s921_s0, %s404_s29  ;;  %s143_s18 = scalar_lea.vmem [#allocation2], %s395_s27 }
  0x35   : > { %s152_s5 = sshll.u32 %s143_s18, 4  ;;  %p772_p13 = pnand %p428_p12, %p745_p6  ;;  %s768_s5 = int_to_ptr.vmem [resolvable:$true] %s152_s5 }
  0x36   : > { %s776_s15 = scalar_lea.sflag [#allocation3], %s139_s23  ;;  %s512_s16 = scalar_lea.hbm %s766_s4, 1024 }
  0x37   : > { %p513_p0 = scmp.ne.s32.totalorder %s766_s4, %s512_s16  ;;  %p514_p3 = pneg %p772_p13 }
  0x38   : > { %s517_s22 = scalar_lea.hbm %s921_s0, 2048  ;;  %p518_p9 = scmp.lt.u32.totalorder %s766_s4, %s921_s0 }
  0x39   : > { %p515_p5 = pnand %p514_p3, %p513_p0  ;;  %p519_p1 = scmp.lt.u32.totalorder %s517_s22, %s512_s16 }
  0x3a   : > { %p521_p4 = scmp.lt.u32.totalorder %s512_s16, %s766_s4 }
  0x3b   : > { %p516_p7 = pneg %p515_p5  ;;  %p520_p2 = por %p519_p1, %p518_p9 }
  0x3d   : > { %p522_p6 = por %p521_p4, %p520_p2 }
  0x3f   : > { %p523_p8 = pnand %p522_p6, %p516_p7 }
  0x41   : > { %526 = shalt.err (!%p523_p8)
}
  0x42   : > { %s527_s23 = scalar_lea.vmem %s768_s5, 1024  ;;  %s633_s3 = smov [#allocation2]  }
  0x43   : > { %p528_p12 = scmp.ne.s32.totalorder %s768_s5, %s527_s23  ;;  %s532_s18 = sshll.u32 %s633_s3, 4  ;;  %s533_s18 = int_to_ptr.vmem [resolvable:$false] %s532_s18 }
  0x44   : > { %s534_s26 = scalar_lea.vmem %s533_s18, 2048  ;;  %p535_p5 = scmp.lt.s32.totalorder %s768_s5, %s533_s18 }
  0x45   : > { %p530_p11 = pnand %p528_p12, %p514_p3  ;;  %p536_p9 = scmp.lt.s32.totalorder %s534_s26, %s527_s23 }
  0x47   : > { %p531_p0 = pneg %p530_p11  ;;  %p537_p1 = por %p536_p9, %p535_p5 }
  0x49   : > { %p538_p2 = pnand %p537_p1, %p531_p0 }
  0x4b   : > { %541 = shalt.err (!%p538_p2)
}
  0x4c   : > { %422 = dma.hbm_to_vmem [thread:$0]  (!%p772_p13), %s766_s4, 1024, %s768_s5, %s776_s15, %s631_s6, %s631_s6, %s632_s7  }
  0x4d   : > { %p938_p3 = scmp.ne.s32.totalorder %s932_s21, 0 }
  0x4e   : > { %s810_s16 = sand.u32 (!%p938_p3), 1, %s612_s10   ;;  %p939_p7 = scmp.ne.s32.totalorder (!%p938_p3), %s930_s19, 0 }
  0x4f   : > { %164 = sbr.rel (%p938_p3) target bundleno = 127 (0x7f), region = 28  ;;  %s399_s27 = sshll.u32 (!%p938_p3), %s810_s16, 6 }
  0x50   : > { %s167_s22 = scalar_lea.sflag (!%p938_p3), [#allocation3], %s810_s16  ;;  %s170_s29 = scalar_lea.vmem (!%p938_p3), [#allocation2], %s399_s27 }
  0x56   : > { %595 = dma.done.wait (%p939_p7), %s167_s22, 1024  }
  0x57   : > { %597 = vsyncadd (%p939_p7), %s167_s22, 4294966272  ;;  %p940_p4 = scmp.ne.s32.totalorder %s928_s17, 0 }
  0x59   : > { %599 = dma.done.wait (%p940_p4), [#allocation6], 4096  }
  0x5a   : > { %601 = vsyncadd (%p940_p4), [#allocation6], 4294963200  ;;  %s405_s21 = smul.u32 320, %s810_s16  ;;  %v197_v0 = vld [vmem:[%s170_s29] sm:$0xff]  ;;  %v198_v1 = vld [vmem:[%s170_s29 + $0x8] sm:$0xff]  ;;  %s278_s5 = scalar_lea.sflag [#allocation4], %s810_s16 }
  0x5b   : > { %v199_v2 = vld [vmem:[%s170_s29 + $0x10] sm:$0xff]  ;;  %v200_v3 = vld [vmem:[%s170_s29 + $0x18] sm:$0xff]  ;;  %v201_v4 = vld [vmem:[%s170_s29 + $0x20] sm:$0xff]  ;;  %s406_s17 = smul.u32 5120, %s620_s12  ;;  %s634_s15 = smov [#allocation7]  }
  0x5c   : > { %s823_s6 = scalar_lea.vmem [#allocation7], %s405_s21  ;;  %v202_v5 = vld [vmem:[%s170_s29 + $0x28] sm:$0xff]  ;;  %v203_v6 = vld [vmem:[%s170_s29 + $0x30] sm:$0xff]  ;;  %v204_v7 = vld [vmem:[%s170_s29 + $0x38] sm:$0xff]  ;;  %s546_s30 = sshll.u32 %s634_s15, 4  ;;  %s547_s30 = int_to_ptr.vmem [resolvable:$false] %s546_s30 }
  0x5d   : > { %205 = vst [vmem:[%s823_s6] sm:$0xff] %v197_v0  ;;  %206 = vst [vmem:[%s823_s6 + $0x8] sm:$0xff] %v198_v1  ;;  %v213_v8 = vld [vmem:[#allocation5] sm:$0xff]  ;;  %v214_v9 = vld [vmem:[#allocation5 + $0x8] sm:$0xff]  ;;  %s293_s19 = sshll.u32 %s823_s6, 4  ;;  %s866_s4 = scalar_lea.hbm %s923_s2, %s406_s17  ;;  %s868_s19 = int_to_ptr.vmem [resolvable:$true] %s293_s19 }
  0x5e   : > { %207 = vst [vmem:[%s823_s6 + $0x10] sm:$0xff] %v199_v2  ;;  %208 = vst [vmem:[%s823_s6 + $0x18] sm:$0xff] %v200_v3  ;;  %v215_v10 = vld [vmem:[#allocation5 + $0x10] sm:$0xff]  ;;  %v216_v11 = vld [vmem:[#allocation5 + $0x18] sm:$0xff]  ;;  %s542_s8 = scalar_lea.vmem %s868_s19, 5120  ;;  %s548_s23 = scalar_lea.vmem %s547_s30, 10240 }
  0x5f   : > { %209 = vst [vmem:[%s823_s6 + $0x20] sm:$0xff] %v201_v4  ;;  %210 = vst [vmem:[%s823_s6 + $0x28] sm:$0xff] %v202_v5  ;;  %v217_v12 = vld [vmem:[#allocation5 + $0x20] sm:$0xff]  ;;  %v218_v13 = vld [vmem:[#allocation5 + $0x28] sm:$0xff]  ;;  %p543_p13 = scmp.ne.s32.totalorder %s868_s19, %s542_s8  ;;  %p549_p12 = scmp.lt.s32.totalorder %s868_s19, %s547_s30 }
  0x60   : > { %211 = vst [vmem:[%s823_s6 + $0x30] sm:$0xff] %v203_v6  ;;  %212 = vst [vmem:[%s823_s6 + $0x38] sm:$0xff] %v204_v7  ;;  %v219_v14 = vld [vmem:[#allocation5 + $0x30] sm:$0xff]  ;;  %v220_v15 = vld [vmem:[#allocation5 + $0x38] sm:$0xff]  ;;  %p550_p11 = scmp.lt.s32.totalorder %s548_s23, %s542_s8 }
  0x61   : > { %245 = vst [vmem:[%s823_s6 + $0x40] sm:$0xff] %v213_v8  ;;  %246 = vst [vmem:[%s823_s6 + $0x48] sm:$0xff] %v214_v9  ;;  %v221_v16 = vld [vmem:[#allocation5 + $0x40] sm:$0xff]  ;;  %v222_v17 = vld [vmem:[#allocation5 + $0x48] sm:$0xff]  ;;  %p544_p6 = pnand %p543_p13, %p751_p10 }
  0x62   : > { %247 = vst [vmem:[%s823_s6 + $0x50] sm:$0xff] %v215_v10  ;;  %248 = vst [vmem:[%s823_s6 + $0x58] sm:$0xff] %v216_v11  ;;  %v223_v18 = vld [vmem:[#allocation5 + $0x50] sm:$0xff]  ;;  %v224_v19 = vld [vmem:[#allocation5 + $0x58] sm:$0xff]  ;;  %p551_p0 = por %p550_p11, %p549_p12 }
  0x63   : > { %249 = vst [vmem:[%s823_s6 + $0x60] sm:$0xff] %v217_v12  ;;  %250 = vst [vmem:[%s823_s6 + $0x68] sm:$0xff] %v218_v13  ;;  %v225_v20 = vld [vmem:[#allocation5 + $0x60] sm:$0xff]  ;;  %v226_v21 = vld [vmem:[#allocation5 + $0x68] sm:$0xff]  ;;  %p545_p8 = pneg %p544_p6 }
  0x64   : > { %251 = vst [vmem:[%s823_s6 + $0x70] sm:$0xff] %v219_v14  ;;  %252 = vst [vmem:[%s823_s6 + $0x78] sm:$0xff] %v220_v15  ;;  %v227_v22 = vld [vmem:[#allocation5 + $0x70] sm:$0xff]  ;;  %v228_v23 = vld [vmem:[#allocation5 + $0x78] sm:$0xff] }
  0x65   : > { %253 = vst [vmem:[%s823_s6 + $0x80] sm:$0xff] %v221_v16  ;;  %254 = vst [vmem:[%s823_s6 + $0x88] sm:$0xff] %v222_v17  ;;  %v229_v24 = vld [vmem:[#allocation5 + $0x80] sm:$0xff]  ;;  %v230_v25 = vld [vmem:[#allocation5 + $0x88] sm:$0xff]  ;;  %p552_p5 = pnand %p551_p0, %p545_p8 }
  0x66   : > { %255 = vst [vmem:[%s823_s6 + $0x90] sm:$0xff] %v223_v18  ;;  %256 = vst [vmem:[%s823_s6 + $0x98] sm:$0xff] %v224_v19  ;;  %v231_v26 = vld [vmem:[#allocation5 + $0x90] sm:$0xff]  ;;  %v232_v27 = vld [vmem:[#allocation5 + $0x98] sm:$0xff] }
  0x67   : > { %257 = vst [vmem:[%s823_s6 + $0xa0] sm:$0xff] %v225_v20  ;;  %258 = vst [vmem:[%s823_s6 + $0xa8] sm:$0xff] %v226_v21  ;;  %v233_v28 = vld [vmem:[#allocation5 + $0xa0] sm:$0xff]  ;;  %v234_v29 = vld [vmem:[#allocation5 + $0xa8] sm:$0xff] }
  0x68   : > { %259 = vst [vmem:[%s823_s6 + $0xb0] sm:$0xff] %v227_v22  ;;  %260 = vst [vmem:[%s823_s6 + $0xb8] sm:$0xff] %v228_v23  ;;  %v235_v30 = vld [vmem:[#allocation5 + $0xb0] sm:$0xff]  ;;  %v236_v31 = vld [vmem:[#allocation5 + $0xb8] sm:$0xff] }
  0x69   : > { %261 = vst [vmem:[%s823_s6 + $0xc0] sm:$0xff] %v229_v24  ;;  %262 = vst [vmem:[%s823_s6 + $0xc8] sm:$0xff] %v230_v25  ;;  %v237_v32 = vld [vmem:[#allocation5 + $0xc0] sm:$0xff]  ;;  %v238_v33 = vld [vmem:[#allocation5 + $0xc8] sm:$0xff] }
  0x6a   : > { %263 = vst [vmem:[%s823_s6 + $0xd0] sm:$0xff] %v231_v26  ;;  %264 = vst [vmem:[%s823_s6 + $0xd8] sm:$0xff] %v232_v27  ;;  %v239_v34 = vld [vmem:[#allocation5 + $0xd0] sm:$0xff]  ;;  %v240_v35 = vld [vmem:[#allocation5 + $0xd8] sm:$0xff] }
  0x6b   : > { %265 = vst [vmem:[%s823_s6 + $0xe0] sm:$0xff] %v233_v28  ;;  %266 = vst [vmem:[%s823_s6 + $0xe8] sm:$0xff] %v234_v29  ;;  %v241_v36 = vld [vmem:[#allocation5 + $0xe0] sm:$0xff]  ;;  %v242_v37 = vld [vmem:[#allocation5 + $0xe8] sm:$0xff] }
  0x6c   : > { %267 = vst [vmem:[%s823_s6 + $0xf0] sm:$0xff] %v235_v30  ;;  %268 = vst [vmem:[%s823_s6 + $0xf8] sm:$0xff] %v236_v31  ;;  %v243_v38 = vld [vmem:[#allocation5 + $0xf0] sm:$0xff]  ;;  %v244_v39 = vld [vmem:[#allocation5 + $0xf8] sm:$0xff] }
  0x6d   : > { %269 = vst [vmem:[%s823_s6 + $0x100] sm:$0xff] %v237_v32  ;;  %270 = vst [vmem:[%s823_s6 + $0x108] sm:$0xff] %v238_v33 }
  0x6e   : > { %271 = vst [vmem:[%s823_s6 + $0x110] sm:$0xff] %v239_v34  ;;  %272 = vst [vmem:[%s823_s6 + $0x118] sm:$0xff] %v240_v35 }
  0x6f   : > { %273 = vst [vmem:[%s823_s6 + $0x120] sm:$0xff] %v241_v36  ;;  %274 = vst [vmem:[%s823_s6 + $0x128] sm:$0xff] %v242_v37 }
  0x70   : > { %275 = vst [vmem:[%s823_s6 + $0x130] sm:$0xff] %v243_v38  ;;  %276 = vst [vmem:[%s823_s6 + $0x138] sm:$0xff] %v244_v39 }
  0x71   : > { %555 = shalt.err (!%p552_p5)
}
  0x72   : > { %s556_s3 = scalar_lea.hbm %s866_s4, 5120  ;;  %s560_s27 = scalar_lea.hbm %s923_s2, 10240 }
  0x73   : > { %p557_p9 = scmp.ne.s32.totalorder %s866_s4, %s556_s3  ;;  %p561_p3 = scmp.lt.u32.totalorder %s866_s4, %s923_s2 }
  0x74   : > { %p562_p7 = scmp.lt.u32.totalorder %s560_s27, %s556_s3  ;;  %p564_p13 = scmp.lt.u32.totalorder %s556_s3, %s866_s4 }
  0x75   : > { %p558_p1 = pnand %p557_p9, %p751_p10 }
  0x76   : > { %p563_p4 = por %p562_p7, %p561_p3 }
  0x77   : > { %p559_p2 = pneg %p558_p1 }
  0x78   : > { %p565_p6 = por %p564_p13, %p563_p4 }
  0x7a   : > { %p566_p8 = pnand %p565_p6, %p559_p2 }
  0x7c   : > { %569 = shalt.err (!%p566_p8)
}
  0x7d   : > { %s635_s21 = smov 256   ;;  %s636_s6 = smov 16  }
  0x7e   : > { %413 = dma.vmem_to_hbm [thread:$0]  (%p751_p10), %s868_s19, 5120, %s866_s4, %s278_s5, %s635_s21, %s635_s21, %s636_s6  }
  0x7f PF: > { %s308_s17 = sand.u32 1, %s608_s9   ;;  %p941_p12 = scmp.ne.s32.totalorder %s931_s20, 0 }
  0x80   : > { %p942_p11 = scmp.ge.s32.totalorder %s628_s14, 2  ;;  %s309_s12 = scalar_lea.sflag [#allocation4], %s308_s17 }
  0x82   : > { %p424_p0 = pnand %p942_p11, %p941_p12 }
  0x84   : > { %603 = dma.done.wait (!%p424_p0), %s309_s12, 5120  }
  0x85   : > { %605 = vsyncadd (!%p424_p0), %s309_s12, 4294962176  ;;  %s19_s14 = sadd.s32 1, %s628_s14   ;;  %s943_s9 = smov %s612_s10 }
  0x86   : > { %p16_p5 = scmp.ge.s32.totalorder %s19_s14, 4   ;;  %s944_s10 = smov %s616_s11 }
  0x87   : > { %s945_s11 = smov %s760_s28  ;;  %s946_s12 = smov %s624_s13 }
  0x88   : > { %s947_s13 = smov %s949_s25  ;;  %18 = sbr.rel (!%p16_p5) target bundleno = 7 (0x7), region = 77 }
  0x8f   :  { %314 = vsyncpa [#allocation3], 1 }
  0x90   :  { %316 = vsyncpa [#allocation3 + $0x1], 1 }
  0x91   :  { %317 = vsyncpa [#allocation6], 1 }
  0x92   :  { %318 = vsyncpa [#allocation4], 1 }
  0x93   :  { %320 = vsyncpa [#allocation4 + $0x1], 1 }

</bundles_post_ra>
